<compile_context>
chip_gen: v6e
topology: v6e:2x2x1
jax: 0.10.0
libtpu: 0.0.40
codegen_flags: <defaults>
</compile_context>

<pallas_src>
import functools

import jax
import jax.numpy as jnp
from jax import lax
from jax.experimental import pallas as pl
from jax.experimental.pallas import tpu as pltpu


def _linear_clamp_kernel(x_ref, w_ref, b_ref, o_ref):
    x = x_ref[...]            # (TM, K)
    w = w_ref[...]            # (N, K)  -- pre-scaled by 0.5 in the wrapper
    b = b_ref[...]            # (1, N)  -- pre-folded (bias + 3) * 0.5
    # x @ w.T without materializing a transposed weight copy.
    y = lax.dot_general(
        x, w,
        dimension_numbers=(((1,), (1,)), ((), ())),
        preferred_element_type=jnp.float32,
    )
    # Folded epilogue: clip((z)*0.5, -0.5, 0.5) == clip(z, -1, 1) * 0.5
    y = jnp.clip(y + b, -0.5, 0.5)
    o_ref[...] = y.astype(o_ref.dtype)


@functools.partial(jax.jit)
def linear_clamp(x, weight, bias):
    """x: (M, K) f32, weight: (N, K) f32 (PyTorch layout), bias: (N,) f32."""
    M, K = x.shape
    N = weight.shape[0]

    # One-time algebraic folding of the elementwise epilogue (12 / 36 elements).
    w_f = weight * 0.5                       # (N, K), kept in PyTorch layout
    b_f = ((bias + 3.0) * 0.5).reshape(1, N)  # (1, N), >= 2D for TPU layout

    # Tile the batch dimension; keep K and N whole (they are tiny).
    TM = M if M <= 1024 else 1024
    grid_m = pl.cdiv(M, TM)

    return pl.pallas_call(
        _linear_clamp_kernel,
        out_shape=jax.ShapeDtypeStruct((M, N), x.dtype),
        grid=(grid_m,),
        in_specs=[
            pl.BlockSpec((TM, K), lambda i: (i, 0)),   # streamed x tiles
            pl.BlockSpec((N, K), lambda i: (0, 0)),    # resident weight
            pl.BlockSpec((1, N), lambda i: (0, 0)),    # resident bias
        ],
        out_specs=pl.BlockSpec((TM, N), lambda i: (i, 0)),
        compiler_params=pltpu.CompilerParams(
            dimension_semantics=("parallel",)),        # v7x: split M across TCs
        cost_estimate=pl.CostEstimate(
            flops=2 * M * K * N,
            transcendentals=0,
            bytes_accessed=4 * (M * K + K * N + M * N)),
    )(x, w_f, b_f)


def reference(x, weight, bias):
    y = x @ weight.T + bias
    y = y + 3.0
    y = jnp.clip(y, -1.0, 1.0)
    return y * 0.5


if __name__ == "__main__":
    key = jax.random.PRNGKey(0)
    kx, kw, kb = jax.random.split(key, 3)

    in_features, out_features = 3, 12
    bound = 1.0 / (in_features ** 0.5)
    weight = jax.random.uniform(kw, (out_features, in_features),
                                minval=-bound, maxval=bound, dtype=jnp.float32)
    bias = jax.random.uniform(kb, (out_features,),
                              minval=-bound, maxval=bound, dtype=jnp.float32)

    # Module-sized input (torch.randn(2, 3)).
    x = jax.random.normal(kx, (2, 3), dtype=jnp.float32)
    out = jax.block_until_ready(linear_clamp(x, weight, bias))
    ref = reference(x, weight, bias)
    assert out.shape == (2, 12)
    assert jnp.allclose(out, ref, atol=1e-5, rtol=1e-5)

    # Sanity-check the tiled (multi-grid-point, partial last block) path.
    x_big = jax.random.normal(kx, (2050, 3), dtype=jnp.float32)
    out_big = jax.block_until_ready(linear_clamp(x_big, weight, bias))
    ref_big = reference(x_big, weight, bias)
    assert out_big.shape == (2050, 12)
    assert jnp.allclose(out_big, ref_big, atol=1e-5, rtol=1e-5)

    print("KERNEL_OK")
</pallas_src>

<mosaic_0001>
module attributes {stable_mosaic.version = 11 : i64} {
  func.func @_linear_clamp_kernel(%arg0: i32, %arg1: memref<2x3xf32, #tpu.memory_space<vmem>>, %arg2: memref<12x3xf32, #tpu.memory_space<vmem>>, %arg3: memref<1x12xf32, #tpu.memory_space<vmem>>, %arg4: memref<2x12xf32, #tpu.memory_space<vmem>>) attributes {dimension_semantics = [#tpu.dimension_semantics<parallel>], iteration_bounds = array<i64: 1>, scalar_prefetch = 0 : i64, scratch_operands = 0 : i64, tpu.core_type = #tpu.core_type<tc>, window_params = [{transform_indices = @transform_0, window_bounds = array<i64: 2, 3>}, {pipeline_mode = #tpu.pipeline_mode<synchronous>, transform_indices = @transform_1, window_bounds = array<i64: 12, 3>}, {pipeline_mode = #tpu.pipeline_mode<synchronous>, transform_indices = @transform_2, window_bounds = array<i64: 1, 12>}, {transform_indices = @transform_3, window_bounds = array<i64: 2, 12>}]} {
    %c0 = arith.constant 0 : index
    %c0_0 = arith.constant 0 : index
    %0 = vector.load %arg1[%c0, %c0_0] : memref<2x3xf32, #tpu.memory_space<vmem>>, vector<2x3xf32>
    %c0_1 = arith.constant 0 : index
    %c0_2 = arith.constant 0 : index
    %1 = vector.load %arg2[%c0_1, %c0_2] : memref<12x3xf32, #tpu.memory_space<vmem>>, vector<12x3xf32>
    %c0_3 = arith.constant 0 : index
    %c0_4 = arith.constant 0 : index
    %2 = vector.load %arg3[%c0_3, %c0_4] : memref<1x12xf32, #tpu.memory_space<vmem>>, vector<1x12xf32>
    %cst = arith.constant dense<0.000000e+00> : vector<2x12xf32>
    %3 = tpu.matmul %0, %1, %cst {dimension_numbers = #tpu.dot_dimension_numbers<[1], [1], [0], [0], [0, 0, 1, 0], [], []>} : vector<2x3xf32>, vector<12x3xf32>, vector<2x12xf32> -> vector<2x12xf32>
    %4 = vector.broadcast %2 : vector<1x12xf32> to vector<2x12xf32>
    %5 = arith.addf %3, %4 : vector<2x12xf32>
    %cst_5 = arith.constant -5.000000e-01 : f32
    %cst_6 = arith.constant 5.000000e-01 : f32
    %6 = vector.broadcast %cst_5 : f32 to vector<2x12xf32>
    %7 = arith.maximumf %6, %5 : vector<2x12xf32>
    %8 = vector.broadcast %cst_6 : f32 to vector<2x12xf32>
    %9 = arith.minimumf %8, %7 : vector<2x12xf32>
    %c0_7 = arith.constant 0 : index
    %c0_8 = arith.constant 0 : index
    %10 = vector.load %arg4[%c0_7, %c0_8] : memref<2x12xf32, #tpu.memory_space<vmem>>, vector<2x12xf32>
    tpu.vector_store %arg4[%c0_7, %c0_8], %9 {strides = array<i32>} : memref<2x12xf32, #tpu.memory_space<vmem>>, vector<2x12xf32>,
    return
  }
  func.func @transform_0(%arg0: i32) -> (i32, i32) {
    %c0_i32 = arith.constant 0 : i32
    %c0_i32_0 = arith.constant 0 : i32
    return %arg0, %c0_i32 : i32, i32
  }
  func.func @transform_1(%arg0: i32) -> (i32, i32) {
    %c0_i32 = arith.constant 0 : i32
    %c0_i32_0 = arith.constant 0 : i32
    %c0_i32_1 = arith.constant 0 : i32
    return %c0_i32, %c0_i32_0 : i32, i32
  }
  func.func @transform_2(%arg0: i32) -> (i32, i32) {
    %c0_i32 = arith.constant 0 : i32
    %c0_i32_0 = arith.constant 0 : i32
    %c0_i32_1 = arith.constant 0 : i32
    return %c0_i32, %c0_i32_0 : i32, i32
  }
  func.func @transform_3(%arg0: i32) -> (i32, i32) {
    %c0_i32 = arith.constant 0 : i32
    %c0_i32_0 = arith.constant 0 : i32
    return %arg0, %c0_i32 : i32, i32
  }
}

</mosaic_0001>

<bundles_post_ra>
// kernel: linear_clamp.1
= control target key start
LH: loop header
LB: loop body
LE: loop exit
PB: predicated region body
PF: predicated region fallthrough
CT: control target
= control target key end

     0   :  { %vm25_vm0 = vcmask 23552   ;;  %v163_v1 = vmov 0.0   ;;  %vm164_vm1 = vmmov 0   ;;  %s201_s0 = inlined_call_operand.vmem [shape: f32[2,3], index: 0, kind: input, shape index: {}]   ;;  %s202_s1 = inlined_call_operand.vmem [shape: f32[12,3], index: 1, kind: input, shape index: {}]   ;;  %s203_s2 = inlined_call_operand.vmem [shape: f32[1,12], index: 2, kind: input, shape index: {}]   ;;  %s204_s3 = inlined_call_operand.hbm [shape: f32[2,12], index: 3, kind: output, shape index: {}]  }
   0x1   :  { %v17_v0 = vld [vmem:[%s202_s1 + $0x8] sm:$0xf]  ;;  %131 = vmatprep.subr.mxu0 %v163_v1  ;;  %135 = vmatprep.mubr.msk.f32.mxu0 %vm164_vm1, %v163_v1 }
   0x2   :  { %8 = vsyncpa [#allocation3], 0  ;;  %132 = vmatpush3.xpose.msk.msra.mxu0 %vm25_vm0, %v17_v0  ;;  %v16_v2 = vld [vmem:[%s202_s1] sm:$0xff]  ;;  %s165_s20 = smov [#allocation2]   ;;  %vm107_vm2 = vcmask 91136  }
   0x3   :  { %133 = vmatprep.subr.mxu0 %v163_v1  ;;  %v15_v3 = vld [vmem:[%s201_s0] sm:$0x3]  ;;  %s115_s21 = sshll.u32 %s165_s20, 4  ;;  %s116_s21 = int_to_ptr.vmem [resolvable:$true] %s115_s21 }
   0x4   :  { %v123_v4 = vld [vmem:[%s203_s2] ss:$0 sm:$0xff]  ;;  %s141_s1 = scalar_lea.vmem %s116_s21, 32  ;;  %p146_p1 = scmp.lt.s32.totalorder %s116_s21, %s116_s21 }
   0x5   :  { %p142_p0 = scmp.ne.s32.totalorder %s116_s21, %s141_s1  ;;  %p147_p2 = scmp.lt.s32.totalorder %s141_s1, %s141_s1 }
   0x6   :  { %134 = vmatpush3.xpose.msk.msra.mxu0 %vm25_vm0, %v16_v2 }
   0x7   :  { %p148_p3 = por %p147_p2, %p146_p1 }
   0x9   :  { %136 = vmatmul.mubr.msk.f32.vlgmr.msra.gmra.mxu0 %vm25_vm0, %v15_v3  ;;  %p149_p4 = pnand %p148_p3, %p142_p0 }
  0xc9   :  { %v101_v5 = vpop.f32.mrf.mxu0 }
  0xca   :  { %v102_v6 = vadd.f32 %v123_v4, %v101_v5 }
  0xcb   :  { %v137_v7 = vpop.f32.mrf.mxu0 }
  0xcc   :  { %v127_v8 = vclamps-f32 %v102_v6, 0.5 }
  0xce   :  { %108 = vst.msk [vmem:[#allocation2] sm:$0x3] %vm107_vm2, %v127_v8 }
  0xcf   :  { %152 = shalt.err (!%p149_p4)
}
  0xd0   :  { %118 = dma.vmem_to_hbm [thread:$0]  %s116_s21, 32, %s204_s3, [#allocation3]  }
  0xd1   :  { %161 = dma.done.wait [#allocation3], 32  }
  0xd2   :  { %162 = vsyncadd [#allocation3], 4294967264 }
  0xd3   :  { %122 = vsyncpa [#allocation3], 1 }

</bundles_post_ra>
